<compile_context>
chip_gen: v6e
topology: v6e:2x2x1
jax: 0.10.0
libtpu: 0.0.40
codegen_flags: <defaults>
</compile_context>

<pallas_src>
import numpy as np
import jax
import jax.numpy as jnp
from jax.experimental import pallas as pl
from jax.experimental.pallas import tpu as pltpu

# ----- problem configuration (small shapes consistent with the module) -----
N = 2                        # batch
DIM = 8                      # dim (channels)
H = 16
W = 16
HW = H * W                   # 256 (lane-dense)
RATIO = 0.75
IN_CG = int(DIM * RATIO)     # 6 global channels
IN_CL = DIM - IN_CG          # 2 local channels
OUT_CG = IN_CG
OUT_CL = IN_CL
CM = OUT_CG // 2             # SpectralTransform hidden channels (3)
WF = W // 2 + 1              # rfft width (9); zero-padded to W inside the matrices
NUM_LAYERS = 2
NC = N * DIM                 # batch fused into matmul M: 16 rows
NCM = N * CM                 # spectral-branch rows: 6

# pltpu.roll direction convention (resolved by a runtime probe in __main__ before the
# fused kernel is traced; True means pltpu.roll(x, s) == jnp.roll(x, s)).
_ROLL_MATCHES_JNP = True


# ---------------------------------------------------------------------------
# Parameter construction (deterministic, synthetic)
# ---------------------------------------------------------------------------
def conv_weight(key, co, ci, kh=1, kw=1):
    fan_in = ci * kh * kw
    return jax.random.normal(key, (co, ci, kh, kw), jnp.float32) / np.sqrt(fan_in)


def bn_fold(key, c, eps=1e-5):
    k1, k2, k3, k4 = jax.random.split(key, 4)
    gamma = 1.0 + 0.1 * jax.random.normal(k1, (c,), jnp.float32)
    beta = 0.1 * jax.random.normal(k2, (c,), jnp.float32)
    mean = 0.1 * jax.random.normal(k3, (c,), jnp.float32)
    var = 1.0 + 0.2 * jax.random.uniform(k4, (c,), jnp.float32)
    s = gamma / jnp.sqrt(var + eps)
    b = beta - mean * s
    return s, b


def make_ffc_layer_params(key):
    ks = jax.random.split(key, 8)
    p = {}
    p["l2l"] = conv_weight(ks[0], OUT_CL, IN_CL, 3, 3)
    p["g2l"] = conv_weight(ks[1], OUT_CL, IN_CG, 3, 3)
    p["l2g"] = conv_weight(ks[2], OUT_CG, IN_CL, 3, 3)
    p["st1_w"] = conv_weight(ks[3], CM, IN_CG)[:, :, 0, 0]
    p["st1_s"], p["st1_b"] = bn_fold(ks[4], CM)
    p["fu_w"] = conv_weight(ks[5], 2 * CM, 2 * CM)[:, :, 0, 0]
    p["fu_s"], p["fu_b"] = bn_fold(ks[6], 2 * CM)
    p["st2_w"] = conv_weight(ks[7], OUT_CG, CM)[:, :, 0, 0]
    return p


# ---------------------------------------------------------------------------
# MXU-friendly weight repacking: batch-block-diagonal, BN folded (numpy, done once)
# ---------------------------------------------------------------------------
def prep_weights(layer_params):
    wst, w1, b1, wfu, bfu, w2 = [], [], [], [], [], []
    for p in layer_params:
        l2l = np.asarray(p["l2l"], np.float32)
        g2l = np.asarray(p["g2l"], np.float32)
        l2g = np.asarray(p["l2g"], np.float32)
        # combined 8->8 spatial conv weight (zeros for the missing g->g spatial path)
        wc = np.zeros((DIM, DIM, 3, 3), np.float32)
        wc[:OUT_CL, :IN_CL] = l2l
        wc[:OUT_CL, IN_CL:] = g2l
        wc[OUT_CL:, :IN_CL] = l2g
        # per dy tap: (NC, 3*NC) weight matching the row-stacked [a_left; a_c; a_right]
        # operand, block-diagonal over the batch.
        wdy = np.zeros((3, NC, 3 * NC), np.float32)
        for dy in range(3):
            for dx in range(3):
                for n in range(N):
                    r0 = n * DIM
                    c0 = dx * NC + n * DIM
                    wdy[dy, r0:r0 + DIM, c0:c0 + DIM] = wc[:, :, dy, dx]
        wst.append(wdy)

        # SpectralTransform conv1 (1x1) + folded BN scale; zero cols for local inputs.
        w1s = np.asarray(p["st1_s"], np.float32)[:, None] * np.asarray(p["st1_w"], np.float32)
        w1p = np.zeros((NCM, NC), np.float32)
        b1p = np.zeros((NCM, 1), np.float32)
        for n in range(N):
            w1p[n * CM:(n + 1) * CM, n * DIM + IN_CL:(n + 1) * DIM] = w1s
            b1p[n * CM:(n + 1) * CM, 0] = np.asarray(p["st1_b"], np.float32)
        w1.append(w1p)
        b1.append(b1p)

        # FourierUnit 1x1 conv over interleaved (re, im) channels, split into
        # (rr, ri, ir, ii) blocks, BN scale folded in, block-diag over batch.
        fw = np.asarray(p["fu_w"], np.float32)
        fs = np.asarray(p["fu_s"], np.float32)
        fb = np.asarray(p["fu_b"], np.float32)
        blocks = [fs[0::2, None] * fw[0::2, 0::2], fs[0::2, None] * fw[0::2, 1::2],
                  fs[1::2, None] * fw[1::2, 0::2], fs[1::2, None] * fw[1::2, 1::2]]
        wfl = np.zeros((4, NCM, NCM), np.float32)
        for i, blk in enumerate(blocks):
            for n in range(N):
                wfl[i, n * CM:(n + 1) * CM, n * CM:(n + 1) * CM] = blk
        wfu.append(wfl)
        bfl = np.zeros((2, NCM, 1), np.float32)
        for n in range(N):
            bfl[0, n * CM:(n + 1) * CM, 0] = fb[0::2]
            bfl[1, n * CM:(n + 1) * CM, 0] = fb[1::2]
        bfu.append(bfl)

        # SpectralTransform conv2, zero rows for the local outputs, block-diag.
        w2s = np.asarray(p["st2_w"], np.float32)
        w2p = np.zeros((NC, NCM), np.float32)
        for n in range(N):
            w2p[n * DIM + OUT_CL:(n + 1) * DIM, n * CM:(n + 1) * CM] = w2s
        w2.append(w2p)

    stk = lambda lst: jnp.asarray(np.stack(lst).astype(np.float32))
    return stk(wst), stk(w1), stk(b1), stk(wfu), stk(bfu), stk(w2)


# ---------------------------------------------------------------------------
# Constant matrices: merged real DFT matrices (norm='ortho')
# ---------------------------------------------------------------------------
def make_const_mats():
    """Returns (mf, mi):
       mf = [Mre | Mim]  (HW, 2*HW): t @ mf gives rfft2 real/imag, half-spectrum
                                      zero-padded to full width along k.
       mi = [Gre ; Gim]  (2*HW, HW): [yre | yim] @ mi gives irfft2 (the padded k
                                      columns carry zero inverse weight)."""
    inv = 1.0 / np.sqrt(H * W)
    y = np.arange(H)[:, None, None, None]
    x = np.arange(W)[None, :, None, None]
    h = np.arange(H)[None, None, :, None]
    k = np.arange(W)[None, None, None, :]
    theta = 2.0 * np.pi * (h * y / H + k * x / W)        # indexed [y, x, h, k]
    half = (np.arange(W) < WF).astype(np.float64)[None, None, None, :]
    mre = (np.cos(theta) * half * inv).reshape(HW, HW)            # [(y,x), (h,k)]
    mim = (-np.sin(theta) * half * inv).reshape(HW, HW)
    ck = np.full((W,), 2.0)
    ck[0] = 1.0
    if W % 2 == 0:
        ck[W // 2] = 1.0
    ck[WF:] = 0.0
    ckb = ck[None, None, None, :]
    gre = (np.cos(theta) * ckb * inv).transpose(2, 3, 0, 1).reshape(HW, HW)   # [(h,k),(y,x)]
    gim = (-np.sin(theta) * ckb * inv).transpose(2, 3, 0, 1).reshape(HW, HW)
    mf = np.concatenate([mre, mim], axis=1)              # (HW, 2*HW)
    mi = np.concatenate([gre, gim], axis=0)              # (2*HW, HW)
    return jnp.asarray(mf, jnp.float32), jnp.asarray(mi, jnp.float32)


# ---------------------------------------------------------------------------
# pltpu.roll direction probe (keeps the reflect-shift helpers convention-proof)
# ---------------------------------------------------------------------------
def _roll_matches_jnp():
    def probe(x_ref, o_ref):
        o_ref[...] = pltpu.roll(x_ref[...], shift=1, axis=1)

    x = jnp.tile(jnp.arange(128, dtype=jnp.float32)[None, :], (8, 1))
    y = pl.pallas_call(probe, out_shape=jax.ShapeDtypeStruct((8, 128), jnp.float32))(x)
    return bool(jax.block_until_ready(y)[0, 1] == 0.0)


# ---------------------------------------------------------------------------
# Pallas kernel
# ---------------------------------------------------------------------------
def _ffc_resblock_kernel(x_ref, mf_ref, mi_ref, wst_ref, w1_ref, b1_ref,
                         wfu_ref, bfu_ref, w2_ref, o_ref):
    def mm(a, b):
        # HIGHEST everywhere: Mosaic's dot only supports DEFAULT/HIGHEST and the
        # 1-pass bf16 DEFAULT is outside the 2e-3 validation tolerance.
        return jnp.dot(a, b, preferred_element_type=jnp.float32,
                       precision=jax.lax.Precision.HIGHEST)

    def roll_l(v, s):
        # jnp.roll(v, s, axis=1) regardless of pltpu.roll's rotation convention.
        amt = s if _ROLL_MATCHES_JNP else (HW - s) % HW
        return pltpu.roll(v, shift=amt, axis=1)

    # Lane-index masks for the reflection-pad edge fix-ups (built once, reused by
    # both layers; lane = y*W + x with y = lane // W, x = lane & (W-1)).
    lane = jax.lax.broadcasted_iota(jnp.int32, (NC, HW), 1)
    xpos = jnp.bitwise_and(lane, W - 1)
    m_x0 = xpos == 0
    m_xl = xpos == W - 1
    m_y0 = lane < W
    m_yl = lane >= HW - W

    def dx_taps(v):
        # left tap:  src x-1, reflected to 1     at x = 0
        # right tap: src x+1, reflected to W-2   at x = W-1
        r_p = roll_l(v, 1)        # r_p[..., i] = v[..., i-1]
        r_m = roll_l(v, HW - 1)   # r_m[..., i] = v[..., i+1]
        return jnp.where(m_x0, r_m, r_p), jnp.where(m_xl, r_p, r_m)

    def dy_up(v):      # src y-1, reflected to 1 at y = 0
        return jnp.where(m_y0, roll_l(v, HW - W), roll_l(v, W))

    def dy_down(v):    # src y+1, reflected to H-2 at y = H-1
        return jnp.where(m_yl, roll_l(v, W), roll_l(v, HW - W))

    def ffc_layer(x, L):
        # --- 3x3 convs with reflection pad: XLU rolls + masked edge fix-ups feeding
        #     3 batch-block-diagonal channel-mix matmuls (one per dy tap) ---
        a_l, a_r = dx_taps(x)
        a = jnp.concatenate([a_l, x, a_r], axis=0)            # (3*NC, HW)
        acc = dy_up(mm(wst_ref[L, 0], a))
        acc = acc + mm(wst_ref[L, 1], a)
        acc = acc + dy_down(mm(wst_ref[L, 2], a))
        # acc: local rows = convl2l + convg2l ; global rows = convl2g

        # --- SpectralTransform on the (un-padded) global branch ---
        t = jnp.maximum(mm(w1_ref[L], x) + b1_ref[L], 0.0)     # conv1 + BN + ReLU
        # FourierUnit: rfft2 (ortho) as one wide real-DFT matmul
        z = mm(t, mf_ref[...])                                 # (NCM, 2*HW)
        zre = z[:, :HW]
        zim = z[:, HW:]
        yre = jnp.maximum(mm(wfu_ref[L, 0], zre) + mm(wfu_ref[L, 1], zim)
                          + bfu_ref[L, 0], 0.0)
        yim = jnp.maximum(mm(wfu_ref[L, 2], zre) + mm(wfu_ref[L, 3], zim)
                          + bfu_ref[L, 1], 0.0)
        # irfft2 (ortho) as one stacked inverse-DFT matmul
        fu = mm(jnp.concatenate([yre, yim], axis=1), mi_ref[...])
        # conv2 (zero rows for the local outputs) added on top of the l2g path
        return acc + mm(w2_ref[L], t + fu)

    x0 = x_ref[...]
    y = ffc_layer(x0, 0)
    y = jnp.maximum(y, 0.0)                # activation between the two FFC layers
    y = ffc_layer(y, 1)
    o_ref[...] = x0 + y                    # residual connection


def build_pallas_forward():
    def full(shape):
        return pl.BlockSpec(shape, lambda i, _s=shape: (0,) * len(_s))

    return pl.pallas_call(
        _ffc_resblock_kernel,
        out_shape=jax.ShapeDtypeStruct((NC, HW), jnp.float32),
        grid=(1,),                                         # batch fused into M: one step
        in_specs=[
            full((NC, HW)),                                # x  (N*C rows, lane-dense)
            full((HW, 2 * HW)),                            # [Mre | Mim]  forward DFT
            full((2 * HW, HW)),                            # [Gre ; Gim]  inverse DFT
            full((NUM_LAYERS, 3, NC, 3 * NC)),             # 3x3 conv weights per dy tap
            full((NUM_LAYERS, NCM, NC)),                   # conv1 (BN-folded, block-diag)
            full((NUM_LAYERS, NCM, 1)),                    # conv1 bias
            full((NUM_LAYERS, 4, NCM, NCM)),               # FourierUnit conv (rr,ri,ir,ii)
            full((NUM_LAYERS, 2, NCM, 1)),                 # FourierUnit bias (re, im)
            full((NUM_LAYERS, NC, NCM)),                   # conv2 (zero rows for local out)
        ],
        out_specs=full((NC, HW)),
        compiler_params=pltpu.CompilerParams(dimension_semantics=("arbitrary",)),
    )


# ---------------------------------------------------------------------------
# Pure-JAX reference (lax.conv + jnp.fft) used as a correctness self-check
# ---------------------------------------------------------------------------
def ref_forward(x, layer_params):
    hp = jax.lax.Precision.HIGHEST

    def conv3(inp, wgt):
        return jax.lax.conv_general_dilated(
            inp, wgt, (1, 1), "VALID",
            dimension_numbers=("NCHW", "OIHW", "NCHW"), precision=hp)

    def ffc_layer(z, p):
        zp = jnp.pad(z, ((0, 0), (0, 0), (1, 1), (1, 1)), mode="reflect")
        zlp, zgp = zp[:, :IN_CL], zp[:, IN_CL:]
        zg = z[:, IN_CL:]
        out_l = conv3(zlp, p["l2l"]) + conv3(zgp, p["g2l"])
        l2g = conv3(zlp, p["l2g"])
        t = jnp.einsum("oi,nihw->nohw", p["st1_w"], zg, precision=hp)
        t = jax.nn.relu(t * p["st1_s"][None, :, None, None]
                        + p["st1_b"][None, :, None, None])
        f = jnp.fft.rfft2(t, norm="ortho")
        spec = jnp.stack([f.real, f.imag], axis=2).reshape(z.shape[0], 2 * CM, H, WF)
        y = jnp.einsum("oi,nihk->nohk", p["fu_w"], spec, precision=hp)
        y = jax.nn.relu(y * p["fu_s"][None, :, None, None]
                        + p["fu_b"][None, :, None, None])
        y = y.reshape(z.shape[0], CM, 2, H, WF)
        comp = y[:, :, 0] + 1j * y[:, :, 1]
        fu = jnp.fft.irfft2(comp, s=(H, W), norm="ortho")
        out_g = l2g + jnp.einsum("oc,nchw->nohw", p["st2_w"], t + fu, precision=hp)
        return jnp.concatenate([out_l, out_g], axis=1)

    y = ffc_layer(x, layer_params[0])
    y = jax.nn.relu(y)
    y = ffc_layer(y, layer_params[1])
    return x + y


if __name__ == "__main__":
    # Resolve pltpu.roll's rotation direction before the fused kernel is traced.
    _ROLL_MATCHES_JNP = _roll_matches_jnp()

    key = jax.random.PRNGKey(0)
    kx, k0, k1 = jax.random.split(key, 3)
    x = jax.random.normal(kx, (N, DIM, H, W), jnp.float32)
    layers = [make_ffc_layer_params(k0), make_ffc_layer_params(k1)]
    weights = prep_weights(layers)
    mf, mi = make_const_mats()

    fwd = build_pallas_forward()
    out = fwd(x.reshape(NC, HW), mf, mi, *weights).reshape(N, DIM, H, W)
    out = jax.block_until_ready(out)
    assert out.shape == (N, DIM, H, W) and out.dtype == jnp.float32

    ref = ref_forward(x, layers)
    np.testing.assert_allclose(np.asarray(out), np.asarray(ref),
                               rtol=2e-3, atol=2e-3)
    print("KERNEL_OK")
</pallas_src>

<mosaic_0001>
module attributes {stable_mosaic.version = 11 : i64} {
  func.func @probe(%arg0: memref<8x128xf32, #tpu.memory_space<vmem>>, %arg1: memref<8x128xf32, #tpu.memory_space<vmem>>) attributes {dimension_semantics = [], scalar_prefetch = 0 : i64, scratch_operands = 0 : i64, tpu.core_type = #tpu.core_type<tc>} {
    %c0 = arith.constant 0 : index
    %c0_0 = arith.constant 0 : index
    %0 = vector.load %arg0[%c0, %c0_0] : memref<8x128xf32, #tpu.memory_space<vmem>>, vector<8x128xf32>
    %c1_i32 = arith.constant 1 : i32
    %1 = tpu.dynamic_rotate %0 by %c1_i32 dim 1 : vector<8x128xf32>, i32 -> vector<8x128xf32>
    %c0_1 = arith.constant 0 : index
    %c0_2 = arith.constant 0 : index
    %2 = vector.load %arg1[%c0_1, %c0_2] : memref<8x128xf32, #tpu.memory_space<vmem>>, vector<8x128xf32>
    tpu.vector_store %arg1[%c0_1, %c0_2], %1 {strides = array<i32>} : memref<8x128xf32, #tpu.memory_space<vmem>>, vector<8x128xf32>,
    return
  }
}

</mosaic_0001>

<bundles_post_ra>
// kernel: tpu_custom_call.1
= control target key start
LH: loop header
LB: loop body
LE: loop exit
PB: predicated region body
PF: predicated region fallthrough
CT: control target
= control target key end

     0   :  { %6 = vsyncpa [#allocation3], 0  ;;  %s106_s0 = inlined_call_operand.hbm [shape: f32[8,128], index: 0, kind: input, shape index: {}]   ;;  %s107_s1 = inlined_call_operand.hbm [shape: f32[8,128], index: 1, kind: output, shape index: {}]  }
   0x1   :  { %7 = vsyncpa [#allocation4], 0  ;;  %s87_s6 = smov [#allocation2]  }
   0x2   :  { %s14_s7 = sshll.u32 %s87_s6, 4  ;;  %s15_s7 = int_to_ptr.vmem [resolvable:$true] %s14_s7 }
   0x3   :  { %s51_s8 = scalar_lea.vmem %s15_s7, 128  ;;  %p56_p1 = scmp.lt.s32.totalorder %s15_s7, %s15_s7 }
   0x4   :  { %p52_p0 = scmp.ne.s32.totalorder %s15_s7, %s51_s8  ;;  %p57_p2 = scmp.lt.s32.totalorder %s51_s8, %s51_s8 }
   0x6   :  { %p58_p3 = por %p57_p2, %p56_p1 }
   0x8   :  { %p59_p4 = pnand %p58_p3, %p52_p0 }
   0xa   :  { %62 = shalt.err (!%p59_p4)
}
   0xb   :  { %17 = dma.hbm_to_vmem [thread:$0]  %s106_s0, 128, %s15_s7, [#allocation3]  }
   0xc   :  { %83 = dma.done.wait [#allocation3], 128  }
   0xd   :  { %84 = vsyncadd [#allocation3], 4294967168  ;;  %v21_v0 = vld [vmem:[#allocation2] sm:$0xff]  ;;  %s88_s11 = smov 1   ;;  %s89_s12 = smov [#allocation5]  }
   0xe   :  { %22 = vrot.lane.b32.xlu0 %v21_v0, %s88_s11  ;;  %s31_s13 = sshll.u32 %s89_s12, 4  ;;  %s32_s13 = int_to_ptr.vmem [resolvable:$true] %s31_s13 }
   0xf   :  { %s63_s14 = scalar_lea.vmem %s32_s13, 128  ;;  %p68_p6 = scmp.lt.s32.totalorder %s32_s13, %s32_s13 }
  0x10   :  { %p64_p5 = scmp.ne.s32.totalorder %s32_s13, %s63_s14  ;;  %p69_p7 = scmp.lt.s32.totalorder %s63_s14, %s63_s14 }
  0x12   :  { %p70_p8 = por %p69_p7, %p68_p6 }
  0x14   :  { %p71_p9 = pnand %p70_p8, %p64_p5 }
  0x80   :  { %v23_v1 = vpop.permute.xlu0 %22 }
  0x81   :  { %24 = vst [vmem:[#allocation5] sm:$0xff] %v23_v1 }
  0x82   :  { %74 = shalt.err (!%p71_p9)
}
  0x83   :  { %34 = dma.vmem_to_hbm [thread:$0]  %s32_s13, 128, %s107_s1, [#allocation4]  }
  0x84   :  { %85 = dma.done.wait [#allocation4], 128  }
  0x85   :  { %86 = vsyncadd [#allocation4], 4294967168 }
  0x86   :  { %38 = vsyncpa [#allocation3], 1 }
  0x87   :  { %39 = vsyncpa [#allocation4], 1 }

</bundles_post_ra>
